<compile_context>
chip_gen: v6e
topology: v6e:2x2x1
jax: 0.10.0
libtpu: 0.0.40
codegen_flags: <defaults>
</compile_context>

<pallas_src>
import functools

import jax
import jax.numpy as jnp
from jax.experimental import pallas as pl
from jax.experimental.pallas import tpu as pltpu

# VMEM working budget used to size the batch tile (double-buffered x + out
# tiles plus the resident weight/bias).  8 MiB is comfortably under the v5e
# 16 MiB scoped default and far under v6e/v7x limits.
_VMEM_BUDGET_BYTES = 8 * 1024 * 1024
# Explicit scoped-VMEM limit passed to the compiler (>= budget, <= every
# generation's default/physical capacity, so it can never cause an OOM).
_VMEM_LIMIT_BYTES = 16 * 1024 * 1024


def _value_linear_kernel(x_ref, wt_ref, b_ref, o_ref):
    # o = x @ W^T + b   (MXU matmul, f32 accumulate; narrow N=num_out output)
    o_ref[...] = (
        jnp.dot(x_ref[...], wt_ref[...], preferred_element_type=jnp.float32)
        + b_ref[...]
    ).astype(o_ref.dtype)


def prepare_params(w, b):
    """One-time (init-time) re-layout of nn.Linear parameters.

    w: [num_out, num_inp], b: [num_out]  (PyTorch nn.Linear layout)
    Returns W^T as [num_inp, num_out] and bias as [1, num_out] (f32), so the
    jitted forward contains no per-call transpose / reshape of parameters.
    """
    num_out, num_inp = w.shape
    wt = jnp.asarray(w, jnp.float32).T.reshape(num_inp, num_out)
    b2d = jnp.asarray(b, jnp.float32).reshape(1, num_out)
    return wt, b2d


def _choose_batch_tile(batch, num_inp, num_out, vmem_budget=_VMEM_BUDGET_BYTES):
    """Pick the batch tile from an explicit VMEM budget.

    Accounts for: double-buffered x tile, double-buffered out tile, and the
    (constant-index but still double-buffered) weight/bias blocks.
    """
    per_row = 4 * 2 * (num_inp + num_out)                 # x + out, 2 buffers
    fixed = 4 * 2 * (num_inp * num_out + num_out)         # W^T + bias, 2 buffers
    tb_vmem = max((vmem_budget - fixed) // per_row, 8)

    # Keep >= ~8 grid steps at large batch (pipelining / v7x core split has
    # work to shard) but never let tiles drop below 512 rows, so the ~0.35us
    # fixed per-step overhead stays small relative to the tile DMA.
    tb_steps = max(512, -(-batch // 8))

    tb = int(min(tb_vmem, tb_steps, 4096))
    if tb >= batch:
        return batch                      # one block == full dim (always legal)
    return max((tb // 8) * 8, 8)          # sublane-aligned (multiple of 8 rows)


@jax.jit
def value_network_linear_forward(x, wt, b2d):
    """x: [B, num_inp] f32, wt: [num_inp, num_out] f32, b2d: [1, num_out] f32.

    Returns value estimates of shape [B, num_out] (num_out = 1 for this module),
    identical to PyTorch's `x @ W^T + b`.
    """
    B, num_inp = x.shape
    num_out = wt.shape[1]
    tb = _choose_batch_tile(B, num_inp, num_out)
    grid = (pl.cdiv(B, tb),)

    return pl.pallas_call(
        _value_linear_kernel,
        out_shape=jax.ShapeDtypeStruct((B, num_out), jnp.float32),
        grid_spec=pltpu.PrefetchScalarGridSpec(
            num_scalar_prefetch=0,
            grid=grid,
            in_specs=[
                pl.BlockSpec((tb, num_inp), lambda i: (i, 0)),       # x tile (moves)
                pl.BlockSpec((num_inp, num_out), lambda i: (0, 0)),  # resident W^T
                pl.BlockSpec((1, num_out), lambda i: (0, 0)),        # resident bias
            ],
            # Output block is the final shape — no padding, no post-kernel slice.
            # Pallas masks the out-of-bounds rows of the partial last tile.
            out_specs=pl.BlockSpec((tb, num_out), lambda i: (i, 0)),
        ),
        compiler_params=pltpu.CompilerParams(
            dimension_semantics=("parallel",),
            vmem_limit_bytes=_VMEM_LIMIT_BYTES,
        ),
    )(x, wt, b2d)


if __name__ == "__main__":
    # Small shapes consistent with the module: a flat feature vector per sample.
    B, NUM_INP, NUM_OUT = 8, 128, 1

    key = jax.random.PRNGKey(0)
    kx, kw, kb = jax.random.split(key, 3)

    # Deterministic param init mimicking nn.Linear default:
    # U(-1/sqrt(fan_in), 1/sqrt(fan_in))
    bound = 1.0 / jnp.sqrt(jnp.float32(NUM_INP))
    w = jax.random.uniform(kw, (NUM_OUT, NUM_INP), jnp.float32, -bound, bound)
    b = jax.random.uniform(kb, (NUM_OUT,), jnp.float32, -bound, bound)

    x = jax.random.normal(kx, (B, NUM_INP), jnp.float32)

    # One-time parameter re-layout (done at "init", not per forward call).
    wt, b2d = prepare_params(w, b)

    out = value_network_linear_forward(x, wt, b2d)
    out = jax.block_until_ready(out)

    # Reference check against plain JAX (PyTorch semantics: x @ W^T + b).
    ref = x @ w.T + b
    assert out.shape == (B, NUM_OUT), out.shape
    assert jnp.allclose(out, ref, atol=1e-5, rtol=1e-5)

    print("KERNEL_OK")
</pallas_src>

<mosaic_0001>
module attributes {stable_mosaic.version = 11 : i64} {
  func.func @_value_linear_kernel(%arg0: i32, %arg1: memref<8x128xf32, #tpu.memory_space<vmem>>, %arg2: memref<128x1xf32, #tpu.memory_space<vmem>>, %arg3: memref<1x1xf32, #tpu.memory_space<vmem>>, %arg4: memref<8x1xf32, #tpu.memory_space<vmem>>) attributes {dimension_semantics = [#tpu.dimension_semantics<parallel>], iteration_bounds = array<i64: 1>, scalar_prefetch = 0 : i64, scratch_operands = 0 : i64, tpu.core_type = #tpu.core_type<tc>, window_params = [{transform_indices = @transform_0, window_bounds = array<i64: 8, 128>}, {pipeline_mode = #tpu.pipeline_mode<synchronous>, transform_indices = @transform_1, window_bounds = array<i64: 128, 1>}, {pipeline_mode = #tpu.pipeline_mode<synchronous>, transform_indices = @transform_2, window_bounds = array<i64: 1, 1>}, {transform_indices = @transform_3, window_bounds = array<i64: 8, 1>}]} {
    %c0 = arith.constant 0 : index
    %c0_0 = arith.constant 0 : index
    %0 = vector.load %arg1[%c0, %c0_0] : memref<8x128xf32, #tpu.memory_space<vmem>>, vector<8x128xf32>
    %c0_1 = arith.constant 0 : index
    %c0_2 = arith.constant 0 : index
    %1 = vector.load %arg2[%c0_1, %c0_2] : memref<128x1xf32, #tpu.memory_space<vmem>>, vector<128x1xf32>
    %cst = arith.constant dense<0.000000e+00> : vector<8x1xf32>
    %2 = tpu.matmul %0, %1, %cst {dimension_numbers = #tpu.dot_dimension_numbers<[1], [0], [0], [1], [0, 0, 1, 1], [], []>} : vector<8x128xf32>, vector<128x1xf32>, vector<8x1xf32> -> vector<8x1xf32>
    %c0_3 = arith.constant 0 : index
    %c0_4 = arith.constant 0 : index
    %3 = vector.load %arg3[%c0_3, %c0_4] : memref<1x1xf32, #tpu.memory_space<vmem>>, vector<1x1xf32>
    %4 = vector.broadcast %3 : vector<1x1xf32> to vector<8x1xf32>
    %5 = arith.addf %2, %4 : vector<8x1xf32>
    %c0_5 = arith.constant 0 : index
    %c0_6 = arith.constant 0 : index
    %6 = vector.load %arg4[%c0_5, %c0_6] : memref<8x1xf32, #tpu.memory_space<vmem>>, vector<8x1xf32>
    tpu.vector_store %arg4[%c0_5, %c0_6], %5 {strides = array<i32>} : memref<8x1xf32, #tpu.memory_space<vmem>>, vector<8x1xf32>,
    return
  }
  func.func @transform_0(%arg0: i32) -> (i32, i32) {
    %c0_i32 = arith.constant 0 : i32
    %c0_i32_0 = arith.constant 0 : i32
    return %arg0, %c0_i32 : i32, i32
  }
  func.func @transform_1(%arg0: i32) -> (i32, i32) {
    %c0_i32 = arith.constant 0 : i32
    %c0_i32_0 = arith.constant 0 : i32
    %c0_i32_1 = arith.constant 0 : i32
    return %c0_i32, %c0_i32_0 : i32, i32
  }
  func.func @transform_2(%arg0: i32) -> (i32, i32) {
    %c0_i32 = arith.constant 0 : i32
    %c0_i32_0 = arith.constant 0 : i32
    %c0_i32_1 = arith.constant 0 : i32
    return %c0_i32, %c0_i32_0 : i32, i32
  }
  func.func @transform_3(%arg0: i32) -> (i32, i32) {
    %c0_i32 = arith.constant 0 : i32
    %c0_i32_0 = arith.constant 0 : i32
    return %arg0, %c0_i32 : i32, i32
  }
}

</mosaic_0001>

<bundles_post_ra>
// kernel: value_network_linear_forward.1
= control target key start
LH: loop header
LB: loop body
LE: loop exit
PB: predicated region body
PF: predicated region fallthrough
CT: control target
= control target key end

     0   :  { %v171_v0 = vmov 0.0   ;;  %vm172_vm0 = vmmov 0   ;;  %vm110_vm1 = vcmask 7168   ;;  %s250_s1 = inlined_call_operand.vmem [shape: f32[128,1], index: 1, kind: input, shape index: {}]   ;;  %s251_s2 = inlined_call_operand.<no memory space> [shape: f32[1,1], index: 2, kind: input, shape index: {}]   ;;  %s252_s0 = inlined_call_operand.vmem [shape: f32[8,128], index: 0, kind: input, shape index: {}]   ;;  %s253_s3 = inlined_call_operand.vmem [shape: f32[8,1], index: 3, kind: output, shape index: {}]  }
   0x1   :  { %134 = vmatprep.subr.mxu0 %v171_v0  ;;  %v32_v1 = vld [vmem:[%s250_s1 + $0x78] sm:$0xff]  ;;  %v31_v2 = vld [vmem:[%s250_s1 + $0x70] sm:$0xff]  ;;  %166 = vmatprep.mubr.msk.f32.mxu0 %vm172_vm0, %v171_v0  ;;  %v8_v3 = vstv %s251_s2  ;;  %v30_v4 = vld [vmem:[%s250_s1 + $0x68] sm:$0xff] }
   0x2   :  { %135 = vmatpush3.msra.mxu0 %v32_v1  ;;  %9 = vst [vmem:[#allocation2] sm:$0x1] %v8_v3  ;;  %v29_v5 = vld [vmem:[%s250_s1 + $0x60] sm:$0xff]  ;;  %v28_v6 = vld [vmem:[%s250_s1 + $0x58] sm:$0xff]  ;;  %v27_v7 = vld [vmem:[%s250_s1 + $0x50] sm:$0xff] }
   0x3   :  { %136 = vmatprep.subr.mxu0 %v171_v0  ;;  %v26_v8 = vld [vmem:[%s250_s1 + $0x48] sm:$0xff]  ;;  %v25_v9 = vld [vmem:[%s250_s1 + $0x40] sm:$0xff]  ;;  %v24_v10 = vld [vmem:[%s250_s1 + $0x38] sm:$0xff] }
   0x4   :  { %137 = vmatpush3.msra.mxu0 %v31_v2  ;;  %v23_v11 = vld [vmem:[%s250_s1 + $0x30] sm:$0xff]  ;;  %v22_v12 = vld [vmem:[%s250_s1 + $0x28] sm:$0xff]  ;;  %v21_v13 = vld [vmem:[%s250_s1 + $0x20] sm:$0xff] }
   0x5   :  { %138 = vmatprep.subr.mxu0 %v171_v0  ;;  %v20_v14 = vld [vmem:[%s250_s1 + $0x18] sm:$0xff]  ;;  %v19_v15 = vld [vmem:[%s250_s1 + $0x10] sm:$0xff]  ;;  %v18_v16 = vld [vmem:[%s250_s1 + $0x8] sm:$0xff] }
   0x6   :  { %139 = vmatpush3.msra.mxu0 %v30_v4  ;;  %v17_v17 = vld [vmem:[%s250_s1] sm:$0xff] }
   0x7   :  { %140 = vmatprep.subr.mxu0 %v171_v0  ;;  %v16_v18 = vld [vmem:[%s252_s0] sm:$0xff] }
   0x8   :  { %141 = vmatpush3.msra.mxu0 %v29_v5 }
   0x9   :  { %142 = vmatprep.subr.mxu0 %v171_v0  ;;  %v116_v19 = vld [vmem:[#allocation2] ss:$0 sm:$0xff] }
   0xa   :  { %143 = vmatpush3.msra.mxu0 %v28_v6 }
   0xb   :  { %144 = vmatprep.subr.mxu0 %v171_v0 }
   0xc   :  { %145 = vmatpush3.msra.mxu0 %v27_v7 }
   0xd   :  { %146 = vmatprep.subr.mxu0 %v171_v0 }
   0xe   :  { %147 = vmatpush3.msra.mxu0 %v26_v8 }
   0xf   :  { %148 = vmatprep.subr.mxu0 %v171_v0 }
  0x10   :  { %149 = vmatpush3.msra.mxu0 %v25_v9 }
  0x11   :  { %150 = vmatprep.subr.mxu0 %v171_v0 }
  0x12   :  { %151 = vmatpush3.msra.mxu0 %v24_v10 }
  0x13   :  { %152 = vmatprep.subr.mxu0 %v171_v0 }
  0x14   :  { %153 = vmatpush3.msra.mxu0 %v23_v11 }
  0x15   :  { %154 = vmatprep.subr.mxu0 %v171_v0 }
  0x16   :  { %155 = vmatpush3.msra.mxu0 %v22_v12 }
  0x17   :  { %156 = vmatprep.subr.mxu0 %v171_v0 }
  0x18   :  { %157 = vmatpush3.msra.mxu0 %v21_v13 }
  0x19   :  { %158 = vmatprep.subr.mxu0 %v171_v0 }
  0x1a   :  { %159 = vmatpush3.msra.mxu0 %v20_v14 }
  0x1b   :  { %160 = vmatprep.subr.mxu0 %v171_v0 }
  0x1c   :  { %161 = vmatpush3.msra.mxu0 %v19_v15 }
  0x1d   :  { %162 = vmatprep.subr.mxu0 %v171_v0 }
  0x1e   :  { %163 = vmatpush3.msra.mxu0 %v18_v16 }
  0x1f   :  { %164 = vmatprep.subr.mxu0 %v171_v0 }
  0x20   :  { %165 = vmatpush3.msra.mxu0 %v17_v17 }
  0x21   :  { %167 = vmatmul.mubr.f32.vlgmr.msra.gmra.mxu0 %v16_v18 }
  0xe1   :  { %v106_v20 = vpop.f32.mrf.mxu0 }
  0xe2   :  { %v107_v21 = vadd.f32 %v116_v19, %v106_v20 }
  0xe3   :  { %v168_v22 = vpop.f32.mrf.mxu0 }
  0xe4   :  { %111 = vst.msk [vmem:[%s253_s3] sm:$0xff] %vm110_vm1, %v107_v21 }

</bundles_post_ra>
